<compile_context>
chip_gen: v7x
topology: tpu7x:2x2x1
jax: 0.10.0
libtpu: 0.0.40
codegen_flags: <defaults>
</compile_context>

<pallas_src>
import jax
import jax.numpy as jnp
from jax.experimental import pallas as pl
from jax.experimental.pallas import tpu as pltpu

BN_EPS = 1e-5
LANES = 128

# Architecture-fixed hidden widths of ModifiedMLP1 (D4 padded 64 -> 128).
D1, D2, D3, D4 = 512, 256, 128, 128
# Row layout of the packed fc3/fc4/fc5 weight slab (all offsets are 16-aligned
# so the in-kernel slices stay free views even for bf16 sublane packing).
W3_OFF, W3_ROWS = 0, D2          # w3: (256, 128)
W4_OFF, W4_ROWS = 256, D3        # w4: (128, 128)
W5_OFF, W5_ROWS = 384, D4        # w5: (128, 128)
PACK_ROWS = W5_OFF + W5_ROWS     # 512


# ----------------------------- Pallas kernel --------------------------------

def _fused_mlp_kernel(x_ref, w1_ref, w2_ref, wp_hbm_ref, b_ref, o_ref,
                      wp_vmem, sem):
    """Entire ModifiedMLP1 forward (eval mode, BN pre-folded into weights)."""
    f32 = jnp.float32

    # Overlap the fc3..fc5 weight-slab fetch with the fc1/fc2 matmuls: the
    # slab lives in pl.ANY (HBM), so it is NOT part of the pre-body DMAs.
    cp = pltpu.make_async_copy(wp_hbm_ref, wp_vmem, sem)
    cp.start()

    def dense(h, w, b, relu):
        # bf16 (or f32) weights feed the MXU directly; f32 accumulation,
        # bias-add / ReLU stay in f32.
        y = jnp.dot(h.astype(w.dtype), w, preferred_element_type=f32) + b
        return jnp.maximum(y, 0.0) if relu else y

    h = x_ref[...].astype(f32)
    h = dense(h, w1_ref[...], b_ref[0:1, 0:D1], True)   # fc1+ReLU (BN1 -> fc2)
    h = dense(h, w2_ref[...], b_ref[1:2, 0:D2], True)   # fc2+ReLU (BN2 -> fc3)

    cp.wait()                                            # slab now in VMEM
    w3 = wp_vmem[W3_OFF:W3_OFF + W3_ROWS, :]
    w4 = wp_vmem[W4_OFF:W4_OFF + W4_ROWS, :]
    w5 = wp_vmem[W5_OFF:W5_OFF + W5_ROWS, :]

    h = dense(h, w3, b_ref[2:3, 0:D3], True)             # fc3+ReLU (BN3 -> fc4)
    h = dense(h, w4, b_ref[3:4, 0:D4], True)             # fc4+ReLU (BN4 -> fc5)
    # Dropout(p=0.5): identity at eval time.
    # TODO(synk): training-mode dropout (pltpu.prng_* Bernoulli mask) and
    # batch-statistics BatchNorm are not implemented; eval-mode forward only.
    o_ref[...] = dense(h, w5, b_ref[4:5, 0:LANES], False).astype(o_ref.dtype)


# ------------------------- parameter prep / folding -------------------------

def fold_bn_and_pack(params, weight_dtype=jnp.bfloat16):
    """Fold eval-mode BatchNorm into the following layer, pad fc4-out / fc5-in
    (64->128) and fc5-out (->128 lanes), then pack:
      * w3 / padded w4 / padded w5 row-concatenated into one (512, 128) slab,
      * all 5 biases into one (8, 512) f32 slab (one zero-padded row each).

    params: [(w, b, gamma, beta, mean, var)] * 4 hidden layers + [(w, b)].
    Returns (w1, w2, w_packed, bias_slab, n_out).
    """
    folded = []
    scale = shift = None
    for p in params:
        w, b = p[0], p[1]
        if scale is not None:
            b = b + shift @ w            # uses the *original* w of this layer
            w = w * scale[:, None]
        if len(p) == 6:
            gamma, beta, mean, var = p[2], p[3], p[4], p[5]
            scale = gamma * jax.lax.rsqrt(var + BN_EPS)
            shift = beta - mean * scale
        else:
            scale = shift = None
        folded.append((w, b))

    (w1, b1), (w2, b2), (w3, b3), (w4, b4), (w5, b5) = folded
    n_out = w5.shape[1]
    assert n_out <= LANES, "weight packing assumes output_size <= 128"

    # Pad fc4's 64 output features / fc5's 64 input features to 128: padded
    # activations are ReLU(0 + 0) = 0 and meet zero rows of w5, so the result
    # is unchanged but every tile is lane-dense.
    w4 = jnp.pad(w4, ((0, 0), (0, LANES - w4.shape[1])))
    b4 = jnp.pad(b4, ((0, LANES - b4.shape[0]),))
    w5 = jnp.pad(w5, ((0, LANES - w5.shape[0]), (0, 0)))
    # Lane-dense final output (wrapper slices back to n_out).
    w5 = jnp.pad(w5, ((0, 0), (0, LANES - n_out)))
    b5 = jnp.pad(b5, ((0, LANES - n_out),))

    # One (512, 128) weight slab for fc3/fc4/fc5.
    w_packed = jnp.concatenate([w3, w4, w5], axis=0).astype(weight_dtype)
    assert w_packed.shape == (PACK_ROWS, LANES)

    # One (8, 512) f32 bias slab (biases carry the BN shift; keep them f32).
    def _row(b):
        return jnp.pad(b, ((0, D1 - b.shape[0]),))
    zero_row = jnp.zeros((D1,), jnp.float32)
    bias_slab = jnp.stack([_row(b1), _row(b2), _row(b3), _row(b4), _row(b5),
                           zero_row, zero_row, zero_row]).astype(jnp.float32)

    return (w1.astype(weight_dtype), w2.astype(weight_dtype),
            w_packed, bias_slab, n_out)


# -------------------------------- forward -----------------------------------

def modified_mlp1_forward(prepared, x):
    w1, w2, w_packed, bias_slab, n_out = prepared
    M = x.shape[0]

    vmem = pl.BlockSpec(memory_space=pltpu.MemorySpace.VMEM)
    out_padded = pl.pallas_call(
        _fused_mlp_kernel,
        out_shape=jax.ShapeDtypeStruct((M, LANES), jnp.float32),
        in_specs=[vmem,                                   # x
                  vmem,                                   # w1
                  vmem,                                   # w2
                  pl.BlockSpec(memory_space=pl.ANY),      # packed fc3..fc5 slab
                  vmem],                                  # bias slab
        out_specs=vmem,
        scratch_shapes=[pltpu.VMEM(w_packed.shape, w_packed.dtype),
                        pltpu.SemaphoreType.DMA(())],
    )(x, w1, w2, w_packed, bias_slab)
    return out_padded[:, :n_out]


# ------------------------------ parameter init -------------------------------

def init_linear(key, fan_in, fan_out):
    """torch nn.Linear default init: U(-1/sqrt(fan_in), 1/sqrt(fan_in))."""
    kw, kb = jax.random.split(key)
    bound = 1.0 / jnp.sqrt(fan_in)
    w = jax.random.uniform(kw, (fan_in, fan_out), jnp.float32, -bound, bound)
    b = jax.random.uniform(kb, (fan_out,), jnp.float32, -bound, bound)
    return w, b


def init_batchnorm(key, n):
    # Non-trivial gamma/beta/running stats so the BN fold is actually
    # exercised (torch defaults would be a near-identity).
    kg, kb, km, kv = jax.random.split(key, 4)
    gamma = jax.random.uniform(kg, (n,), jnp.float32, 0.5, 1.5)
    beta = 0.1 * jax.random.normal(kb, (n,), jnp.float32)
    mean = 0.5 * jax.random.normal(km, (n,), jnp.float32)
    var = jax.random.uniform(kv, (n,), jnp.float32, 0.5, 1.5)
    return gamma, beta, mean, var


def make_params(key, input_size, output_size):
    dims = [input_size, 512, 256, 128, 64, output_size]   # ModifiedMLP1
    keys = jax.random.split(key, 2 * (len(dims) - 1))
    params = []
    for i in range(len(dims) - 1):
        w, b = init_linear(keys[2 * i], dims[i], dims[i + 1])
        if i < len(dims) - 2:
            params.append((w, b) + init_batchnorm(keys[2 * i + 1], dims[i + 1]))
        else:
            params.append((w, b))
    return params


# ------------------------------ pure-JAX reference ---------------------------

def reference_forward(params, x):
    """Unfolded eval-mode forward: Linear -> ReLU -> BN(running stats) x4,
    Dropout (identity), Linear.  HIGHEST matmul precision for a clean check."""
    hi = jax.lax.Precision.HIGHEST
    h = x
    for p in params[:-1]:
        w, b, gamma, beta, mean, var = p
        z = jnp.maximum(jnp.dot(h, w, precision=hi) + b, 0.0)
        h = (z - mean) * jax.lax.rsqrt(var + BN_EPS) * gamma + beta
    w, b = params[-1]
    return jnp.dot(h, w, precision=hi) + b


# ---------------------------------- main -------------------------------------

if __name__ == "__main__":
    key = jax.random.PRNGKey(0)
    k_param, k_x = jax.random.split(key)

    batch, input_size, output_size = 8, 64, 16
    params = make_params(k_param, input_size, output_size)
    x = jax.random.normal(k_x, (batch, input_size), jnp.float32)

    ref = jax.block_until_ready(reference_forward(params, x))

    # f32-weight path: validates BN fold, padding, packing and kernel wiring.
    out_f32 = jax.block_until_ready(
        modified_mlp1_forward(fold_bn_and_pack(params, jnp.float32), x))
    assert out_f32.shape == (batch, output_size)
    assert jnp.allclose(out_f32, ref, atol=1e-3, rtol=1e-3), \
        float(jnp.max(jnp.abs(out_f32 - ref)))

    # Default deployment path: bf16 weights fed straight to the MXU with f32
    # accumulation; tolerance covers bf16 storage/activation quantization.
    out_bf16 = jax.block_until_ready(
        modified_mlp1_forward(fold_bn_and_pack(params), x))
    assert out_bf16.shape == (batch, output_size)
    assert jnp.allclose(out_bf16, ref, atol=5e-2, rtol=5e-2), \
        float(jnp.max(jnp.abs(out_bf16 - ref)))

    print("KERNEL_OK")
</pallas_src>

<mosaic_0001>
module attributes {stable_mosaic.version = 11 : i64} {
  func.func @_fused_mlp_kernel(%arg0: memref<8x64xf32, #tpu.memory_space<vmem>>, %arg1: memref<64x512xf32, #tpu.memory_space<vmem>>, %arg2: memref<512x256xf32, #tpu.memory_space<vmem>>, %arg3: memref<512x128xf32, #tpu.memory_space<any>>, %arg4: memref<8x512xf32, #tpu.memory_space<vmem>>, %arg5: memref<8x128xf32, #tpu.memory_space<vmem>>, %arg6: memref<512x128xf32, #tpu.memory_space<vmem>>, %arg7: memref<!tpu.dma_semaphore, #tpu.memory_space<semaphore_mem>>) attributes {dimension_semantics = [], scalar_prefetch = 0 : i64, scratch_operands = 2 : i64, tpu.core_type = #tpu.core_type<tc>} {
    tpu.enqueue_dma source(%arg3 : memref<512x128xf32, #tpu.memory_space<any>>) target(%arg6 : memref<512x128xf32, #tpu.memory_space<vmem>>) target_semaphore(%arg7 : memref<!tpu.dma_semaphore, #tpu.memory_space<semaphore_mem>>)
    %c0 = arith.constant 0 : index
    %c0_0 = arith.constant 0 : index
    %0 = vector.load %arg0[%c0, %c0_0] : memref<8x64xf32, #tpu.memory_space<vmem>>, vector<8x64xf32>
    %c0_1 = arith.constant 0 : index
    %c0_2 = arith.constant 0 : index
    %1 = vector.load %arg1[%c0_1, %c0_2] : memref<64x512xf32, #tpu.memory_space<vmem>>, vector<64x512xf32>
    %c0_3 = arith.constant 0 : index
    %c0_4 = arith.constant 0 : index
    %2 = vector.load %arg4[%c0_3, %c0_4] : memref<8x512xf32, #tpu.memory_space<vmem>>, vector<1x512xf32>
    %cst = arith.constant dense<0.000000e+00> : vector<8x512xf32>
    %3 = tpu.matmul %0, %1, %cst {dimension_numbers = #tpu.dot_dimension_numbers<[1], [0], [0], [1], [0, 0, 1, 1], [], []>} : vector<8x64xf32>, vector<64x512xf32>, vector<8x512xf32> -> vector<8x512xf32>
    %4 = vector.broadcast %2 : vector<1x512xf32> to vector<8x512xf32>
    %5 = arith.addf %3, %4 : vector<8x512xf32>
    %cst_5 = arith.constant 0.000000e+00 : f32
    %6 = vector.broadcast %cst_5 : f32 to vector<8x512xf32>
    %7 = arith.maximumf %5, %6 : vector<8x512xf32>
    %c0_6 = arith.constant 0 : index
    %c0_7 = arith.constant 0 : index
    %8 = vector.load %arg2[%c0_6, %c0_7] : memref<512x256xf32, #tpu.memory_space<vmem>>, vector<512x256xf32>
    %c1 = arith.constant 1 : index
    %c0_8 = arith.constant 0 : index
    %9 = vector.load %arg4[%c1, %c0_8] : memref<8x512xf32, #tpu.memory_space<vmem>>, vector<1x256xf32>
    %cst_9 = arith.constant dense<0.000000e+00> : vector<8x256xf32>
    %10 = tpu.matmul %7, %8, %cst_9 {dimension_numbers = #tpu.dot_dimension_numbers<[1], [0], [0], [1], [0, 0, 1, 1], [], []>} : vector<8x512xf32>, vector<512x256xf32>, vector<8x256xf32> -> vector<8x256xf32>
    %11 = vector.broadcast %9 : vector<1x256xf32> to vector<8x256xf32>
    %12 = arith.addf %10, %11 : vector<8x256xf32>
    %cst_10 = arith.constant 0.000000e+00 : f32
    %13 = vector.broadcast %cst_10 : f32 to vector<8x256xf32>
    %14 = arith.maximumf %12, %13 : vector<8x256xf32>
    tpu.wait_dma2 semaphore(%arg7 : memref<!tpu.dma_semaphore, #tpu.memory_space<semaphore_mem>>) src(%arg3 : memref<512x128xf32, #tpu.memory_space<any>>) dst(%arg6 : memref<512x128xf32, #tpu.memory_space<vmem>>)
    %c0_11 = arith.constant 0 : index
    %c0_12 = arith.constant 0 : index
    %15 = vector.load %arg6[%c0_11, %c0_12] : memref<512x128xf32, #tpu.memory_space<vmem>>, vector<256x128xf32>
    %c256 = arith.constant 256 : index
    %c0_13 = arith.constant 0 : index
    %16 = vector.load %arg6[%c256, %c0_13] : memref<512x128xf32, #tpu.memory_space<vmem>>, vector<128x128xf32>
    %c384 = arith.constant 384 : index
    %c0_14 = arith.constant 0 : index
    %17 = vector.load %arg6[%c384, %c0_14] : memref<512x128xf32, #tpu.memory_space<vmem>>, vector<128x128xf32>
    %c2 = arith.constant 2 : index
    %c0_15 = arith.constant 0 : index
    %18 = vector.load %arg4[%c2, %c0_15] : memref<8x512xf32, #tpu.memory_space<vmem>>, vector<1x128xf32>
    %cst_16 = arith.constant dense<0.000000e+00> : vector<8x128xf32>
    %19 = tpu.matmul %14, %15, %cst_16 {dimension_numbers = #tpu.dot_dimension_numbers<[1], [0], [0], [1], [0, 0, 1, 1], [], []>} : vector<8x256xf32>, vector<256x128xf32>, vector<8x128xf32> -> vector<8x128xf32>
    %20 = vector.broadcast %18 : vector<1x128xf32> to vector<8x128xf32>
    %21 = arith.addf %19, %20 : vector<8x128xf32>
    %cst_17 = arith.constant 0.000000e+00 : f32
    %22 = vector.broadcast %cst_17 : f32 to vector<8x128xf32>
    %23 = arith.maximumf %21, %22 : vector<8x128xf32>
    %c3 = arith.constant 3 : index
    %c0_18 = arith.constant 0 : index
    %24 = vector.load %arg4[%c3, %c0_18] : memref<8x512xf32, #tpu.memory_space<vmem>>, vector<1x128xf32>
    %cst_19 = arith.constant dense<0.000000e+00> : vector<8x128xf32>
    %25 = tpu.matmul %23, %16, %cst_19 {dimension_numbers = #tpu.dot_dimension_numbers<[1], [0], [0], [1], [0, 0, 1, 1], [], []>} : vector<8x128xf32>, vector<128x128xf32>, vector<8x128xf32> -> vector<8x128xf32>
    %26 = vector.broadcast %24 : vector<1x128xf32> to vector<8x128xf32>
    %27 = arith.addf %25, %26 : vector<8x128xf32>
    %cst_20 = arith.constant 0.000000e+00 : f32
    %28 = vector.broadcast %cst_20 : f32 to vector<8x128xf32>
    %29 = arith.maximumf %27, %28 : vector<8x128xf32>
    %c4 = arith.constant 4 : index
    %c0_21 = arith.constant 0 : index
    %30 = vector.load %arg4[%c4, %c0_21] : memref<8x512xf32, #tpu.memory_space<vmem>>, vector<1x128xf32>
    %cst_22 = arith.constant dense<0.000000e+00> : vector<8x128xf32>
    %31 = tpu.matmul %29, %17, %cst_22 {dimension_numbers = #tpu.dot_dimension_numbers<[1], [0], [0], [1], [0, 0, 1, 1], [], []>} : vector<8x128xf32>, vector<128x128xf32>, vector<8x128xf32> -> vector<8x128xf32>
    %32 = vector.broadcast %30 : vector<1x128xf32> to vector<8x128xf32>
    %33 = arith.addf %31, %32 : vector<8x128xf32>
    %c0_23 = arith.constant 0 : index
    %c0_24 = arith.constant 0 : index
    %34 = vector.load %arg5[%c0_23, %c0_24] : memref<8x128xf32, #tpu.memory_space<vmem>>, vector<8x128xf32>
    tpu.vector_store %arg5[%c0_23, %c0_24], %33 {strides = array<i32>} : memref<8x128xf32, #tpu.memory_space<vmem>>, vector<8x128xf32>,
    return
  }
}

</mosaic_0001>

<bundles_post_ra>
// kernel: tpu_custom_call.1
= control target key start
LH: loop header
LB: loop body
LE: loop exit
PB: predicated region body
PF: predicated region fallthrough
CT: control target
= control target key end

     0   :  { %10 = vsyncpa [#allocation5], 0  ;;  %s1589_s0 = inlined_call_operand.hbm [shape: f32[8,64], index: 0, kind: input, shape index: {}]   ;;  %s1590_s1 = inlined_call_operand.hbm [shape: f32[64,512], index: 1, kind: input, shape index: {}]   ;;  %s1591_s2 = inlined_call_operand.hbm [shape: f32[512,256], index: 2, kind: input, shape index: {}]   ;;  %s1592_s3 = inlined_call_operand.hbm [shape: f32[512,128], index: 3, kind: input, shape index: {}]   ;;  %s1593_s4 = inlined_call_operand.hbm [shape: f32[8,512], index: 4, kind: input, shape index: {}]   ;;  %s1594_s5 = inlined_call_operand.hbm [shape: f32[8,128], index: 5, kind: output, shape index: {}]  }
   0x1   :  { %11 = vsyncpa [#allocation8], 0 }
   0x2   :  { %12 = vsyncpa [#allocation11], 0 }
   0x3   :  { %13 = vsyncpa [#allocation6], 0  ;;  %s1418_s18 = smov [#allocation7]   ;;  %s1276_s22 = scalar_lea.hbm %s1590_s1, 4096 }
   0x4   :  { %s29_s19 = sshll.u32 %s1418_s18, 4  ;;  %p1277_p0 = scmp.ne.s32.totalorder %s1590_s1, %s1276_s22  ;;  %s30_s19 = int_to_ptr.vmem [resolvable:$true] %s29_s19 }
   0x5   :  { %p1280_p1 = scmp.lt.u32.totalorder %s1276_s22, %s1590_s1 }
   0x7   :  { %p1282_p2 = pnand %p1280_p1, %p1277_p0 }
   0x9   :  { %1285 = shalt.err (!%p1282_p2)
}
   0xa   :  { %s1286_s27 = scalar_lea.vmem %s30_s19, 4096  ;;  %p1291_p4 = scmp.lt.s32.totalorder %s30_s19, %s30_s19 }
   0xb   :  { %p1287_p3 = scmp.ne.s32.totalorder %s30_s19, %s1286_s27  ;;  %p1292_p5 = scmp.lt.s32.totalorder %s1286_s27, %s1286_s27 }
   0xd   :  { %p1293_p6 = por %p1292_p5, %p1291_p4 }
   0xf   :  { %p1294_p7 = pnand %p1293_p6, %p1287_p3 }
  0x11   :  { %1297 = shalt.err (!%p1294_p7)
}
  0x12   :  { %s1419_s28 = smov 512   ;;  %s1420_s29 = smov 32  }
  0x13   :  { %35 = dma.hbm_to_vmem [thread:$0]  %s1590_s1, 4096, %s30_s19, [#allocation8], %s1419_s28, %s1419_s28, %s1420_s29  }
  0x14   :  { %s1421_s7 = smov [#allocation4]   ;;  %s1422_s9 = smov [#allocation9]  }
  0x15   :  { %s20_s8 = sshll.u32 %s1421_s7, 4  ;;  %s41_s10 = sshll.u32 %s1422_s9, 4  ;;  %s21_s8 = int_to_ptr.vmem [resolvable:$true] %s20_s8  ;;  %s42_s10 = int_to_ptr.vmem [resolvable:$true] %s41_s10 }
  0x16   :  { %s1298_s13 = scalar_lea.hbm %s1589_s0, 128 }
  0x17   :  { %p1299_p8 = scmp.ne.s32.totalorder %s1589_s0, %s1298_s13  ;;  %p1302_p9 = scmp.lt.u32.totalorder %s1298_s13, %s1589_s0 }
  0x19   :  { %p1304_p10 = pnand %p1302_p9, %p1299_p8 }
  0x1b   :  { %1307 = shalt.err (!%p1304_p10)
}
  0x1c   :  { %s1308_s1 = scalar_lea.vmem %s21_s8, 128  ;;  %p1313_p12 = scmp.lt.s32.totalorder %s21_s8, %s21_s8 }
  0x1d   :  { %p1309_p11 = scmp.ne.s32.totalorder %s21_s8, %s1308_s1  ;;  %p1314_p13 = scmp.lt.s32.totalorder %s1308_s1, %s1308_s1 }
  0x1f   :  { %p1315_p0 = por %p1314_p13, %p1313_p12 }
  0x21   :  { %p1316_p1 = pnand %p1315_p0, %p1309_p11 }
  0x23   :  { %1319 = shalt.err (!%p1316_p1)
}
  0x24   :  { %23 = dma.hbm_to_vmem [thread:$0]  %s1589_s0, 128, %s21_s8, [#allocation5]  }
  0x25   :  { %s1320_s22 = scalar_lea.hbm %s1591_s2, 16384 }
  0x26   :  { %p1321_p2 = scmp.ne.s32.totalorder %s1591_s2, %s1320_s22  ;;  %p1324_p3 = scmp.lt.u32.totalorder %s1320_s22, %s1591_s2 }
  0x28   :  { %p1326_p4 = pnand %p1324_p3, %p1321_p2 }
  0x2a   :  { %1329 = shalt.err (!%p1326_p4)
}
  0x2b   :  { %s1330_s27 = scalar_lea.vmem %s42_s10, 16384  ;;  %p1335_p6 = scmp.lt.s32.totalorder %s42_s10, %s42_s10 }
  0x2c   :  { %p1331_p5 = scmp.ne.s32.totalorder %s42_s10, %s1330_s27  ;;  %p1336_p7 = scmp.lt.s32.totalorder %s1330_s27, %s1330_s27 }
  0x2e   :  { %p1337_p8 = por %p1336_p7, %p1335_p6 }
  0x30   :  { %p1338_p9 = pnand %p1337_p8, %p1331_p5 }
  0x32   :  { %1341 = shalt.err (!%p1338_p9)
}
  0x33   :  { %s1423_s0 = smov 256   ;;  %s1424_s28 = smov 16  }
  0x34   :  { %47 = dma.hbm_to_vmem [thread:$0]  %s1591_s2, 16384, %s42_s10, [#allocation8], %s1423_s0, %s1423_s0, %s1424_s28  }
  0x35   :  { %s1425_s6 = smov [#allocation10]   ;;  %s1342_s11 = scalar_lea.hbm %s1593_s4, 512 }
  0x36   :  { %s54_s7 = sshll.u32 %s1425_s6, 4  ;;  %p1343_p10 = scmp.ne.s32.totalorder %s1593_s4, %s1342_s11  ;;  %s55_s7 = int_to_ptr.vmem [resolvable:$true] %s54_s7 }
  0x37   :  { %p1346_p11 = scmp.lt.u32.totalorder %s1342_s11, %s1593_s4 }
  0x39   :  { %p1348_p12 = pnand %p1346_p11, %p1343_p10 }
  0x3b   :  { %1351 = shalt.err (!%p1348_p12)
}
  0x3c   :  { %s1352_s16 = scalar_lea.vmem %s55_s7, 512  ;;  %p1357_p0 = scmp.lt.s32.totalorder %s55_s7, %s55_s7 }
  0x3d   :  { %p1353_p13 = scmp.ne.s32.totalorder %s55_s7, %s1352_s16  ;;  %p1358_p1 = scmp.lt.s32.totalorder %s1352_s16, %s1352_s16 }
  0x3f   :  { %p1359_p2 = por %p1358_p1, %p1357_p0 }
  0x41   :  { %p1360_p3 = pnand %p1359_p2, %p1353_p13 }
  0x43   :  { %1363 = shalt.err (!%p1360_p3)
}
  0x44   :  { %57 = dma.hbm_to_vmem [thread:$0]  %s1593_s4, 512, %s55_s7, [#allocation11]  }
  0x45   :  { %1408 = dma.done.wait [#allocation5], 128  }
  0x46   :  { %1409 = vsyncadd [#allocation5], 4294967168 }
  0x47   :  { %1410 = dma.done.wait [#allocation8], 20480  }
  0x48   :  { %1411 = vsyncadd [#allocation8], 4294946816 }
  0x49   :  { %1412 = dma.done.wait [#allocation11], 512  }
  0x4a   :  { %1413 = vsyncadd [#allocation11], 4294966784  ;;  %v1426_v0 = vmov 0.0   ;;  %v83_v1 = vld [vmem:[#allocation7 + $0x8] sm:$0xff]  ;;  %v82_v3 = vld [vmem:[#allocation7] sm:$0xff]  ;;  %vm136_vm0 = vcmask 523264  }
  0x4b   :  { %204 = vmatprep.mubr.f32.mxu1 %v1426_v0  ;;  %v87_v2 = vld [vmem:[#allocation7 + $0x28] sm:$0xff]  ;;  %v86_v5 = vld [vmem:[#allocation7 + $0x20] sm:$0xff]  ;;  %v85_v24 = vld [vmem:[#allocation7 + $0x18] sm:$0xff]  ;;  %s1427_s4 = smov [#allocation2]   ;;  %s1364_s19 = scalar_lea.hbm %s1592_s3, 8192 }
  0x4c   :  { %v1019_v4 = vpack.c.bf16 %v87_v2, %v83_v1  ;;  %v91_v6 = vld [vmem:[#allocation7 + $0x48] sm:$0xff]  ;;  %v1021_v8 = vpack.c.bf16 %v86_v5, %v82_v3  ;;  %v90_v10 = vld [vmem:[#allocation7 + $0x40] sm:$0xff]  ;;  %v89_v25 = vld [vmem:[#allocation7 + $0x38] sm:$0xff]  ;;  %s77_s17 = sshll.u32 %s1427_s4, 4  ;;  %p1365_p4 = scmp.ne.s32.totalorder %s1592_s3, %s1364_s19  ;;  %s78_s17 = int_to_ptr.vmem [resolvable:$true] %s77_s17 }
  0x4d   :  { %v95_v7 = vld [vmem:[#allocation7 + $0x68] sm:$0xff]  ;;  %v94_v11 = vld [vmem:[#allocation7 + $0x60] sm:$0xff]  ;;  %v84_v26 = vld [vmem:[#allocation7 + $0x10] sm:$0xff]  ;;  %v1035_v36 = vpack.c.bf16 %v89_v25, %v85_v24  ;;  %p1368_p5 = scmp.lt.u32.totalorder %s1364_s19, %s1592_s3 }
  0x4e   :  { %v1023_v9 = vpack.c.bf16 %v95_v7, %v91_v6  ;;  %v99_v12 = vld [vmem:[#allocation7 + $0x88] sm:$0xff]  ;;  %1020 = vmatprep.subr.bf16.mxu1 %v1019_v4  ;;  %v1025_v14 = vpack.c.bf16 %v94_v11, %v90_v10  ;;  %v98_v16 = vld [vmem:[#allocation7 + $0x80] sm:$0xff]  ;;  %v88_v27 = vld [vmem:[#allocation7 + $0x30] sm:$0xff] }
  0x4f   :  { %v103_v13 = vld [vmem:[#allocation7 + $0xa8] sm:$0xff]  ;;  %1022 = vmatpush1.bf16.msra.mxu1 %v1021_v8  ;;  %v102_v17 = vld [vmem:[#allocation7 + $0xa0] sm:$0xff]  ;;  %v289_v29 = vld [vmem:[#allocation9 + $0x18] sm:$0xff]  ;;  %v1037_v47 = vpack.c.bf16 %v88_v27, %v84_v26  ;;  %p1370_p6 = pnand %p1368_p5, %p1365_p4 }
  0x50   :  { %1024 = vmatprep.subr.bf16.mxu1 %v1023_v9  ;;  %v1027_v15 = vpack.c.bf16 %v103_v13, %v99_v12  ;;  %v107_v18 = vld [vmem:[#allocation7 + $0xc8] sm:$0xff]  ;;  %v1029_v20 = vpack.c.bf16 %v102_v17, %v98_v16  ;;  %v106_v22 = vld [vmem:[#allocation7 + $0xc0] sm:$0xff]  ;;  %v288_v33 = vld [vmem:[#allocation9 + $0x10] sm:$0xff] }
  0x51   :  { %v111_v19 = vld [vmem:[#allocation7 + $0xe8] sm:$0xff]  ;;  %v110_v23 = vld [vmem:[#allocation7 + $0xe0] sm:$0xff]  ;;  %v293_v35 = vld [vmem:[#allocation9 + $0x38] sm:$0xff] }
  0x52   :  { %v1031_v21 = vpack.c.bf16 %v111_v19, %v107_v18  ;;  %v287_v28 = vld [vmem:[#allocation9 + $0x8] sm:$0xff]  ;;  %v286_v30 = vld [vmem:[#allocation9] sm:$0xff]  ;;  %v1033_v31 = vpack.c.bf16 %v110_v23, %v106_v22  ;;  %v93_v37 = vld [vmem:[#allocation7 + $0x58] sm:$0xff] }
  0x53   :  { %1026 = vmatpush1.bf16.msra.mxu1 %v1025_v14  ;;  %v1051_v32 = vpack.c.bf16 %v289_v29, %v287_v28  ;;  %v291_v34 = vld [vmem:[#allocation9 + $0x28] sm:$0xff]  ;;  %v1053_v38 = vpack.c.bf16 %v288_v33, %v286_v30  ;;  %v290_v40 = vld [vmem:[#allocation9 + $0x20] sm:$0xff]  ;;  %v292_v41 = vld [vmem:[#allocation9 + $0x30] sm:$0xff] }
  0x54   :  { %1028 = vmatprep.subr.bf16.mxu1 %v1027_v15  ;;  %v1055_v39 = vpack.c.bf16 %v293_v35, %v291_v34  ;;  %v97_v42 = vld [vmem:[#allocation7 + $0x78] sm:$0xff]  ;;  %v295_v43 = vld [vmem:[#allocation9 + $0x48] sm:$0xff]  ;;  %v1057_v46 = vpack.c.bf16 %v292_v41, %v290_v40  ;;  %v92_v48 = vld [vmem:[#allocation7 + $0x50] sm:$0xff] }
  0x55   :  { %1052 = vmatprep.subr.bf16.mxu0 %v1051_v32  ;;  %v297_v44 = vld [vmem:[#allocation9 + $0x58] sm:$0xff]  ;;  %v294_v49 = vld [vmem:[#allocation9 + $0x40] sm:$0xff]  ;;  %v296_v50 = vld [vmem:[#allocation9 + $0x50] sm:$0xff]  ;;  %v1039_v51 = vpack.c.bf16 %v97_v42, %v93_v37 }
  0x56   :  { %v1510_v45 = vld [vmem:[#allocation4] sm:$0xff]  ;;  %1054 = vmatpush1.bf16.msra.mxu0 %v1053_v38  ;;  %v96_v52 = vld [vmem:[#allocation7 + $0x70] sm:$0xff]  ;;  %v1059_v53 = vpack.c.bf16 %v297_v44, %v295_v43  ;;  %v299_v54 = vld [vmem:[#allocation9 + $0x68] sm:$0xff]  ;;  %v1061_v58 = vpack.c.bf16 %v296_v50, %v294_v49 }
  0x57   :  { %1030 = vmatpush1.bf16.msra.mxu1 %v1029_v20  ;;  %1056 = vmatprep.subr.bf16.mxu0 %v1055_v39  ;;  %v301_v55 = vld [vmem:[#allocation9 + $0x78] sm:$0xff]  ;;  %v1041_v59 = vpack.c.bf16 %v96_v52, %v92_v48  ;;  %v100_v60 = vld [vmem:[#allocation7 + $0x90] sm:$0xff]  ;;  %v298_v62 = vld [vmem:[#allocation9 + $0x60] sm:$0xff] }
  0x58   :  { %1032 = vmatprep.subr.bf16.mxu1 %v1031_v21  ;;  %v101_v56 = vld [vmem:[#allocation7 + $0x98] sm:$0xff]  ;;  %v1063_v61 = vpack.c.bf16 %v301_v55, %v299_v54  ;;  %v300_v63 = vld [vmem:[#allocation9 + $0x70] sm:$0xff]  ;;  %v303_v3 = vld [vmem:[#allocation9 + $0x88] sm:$0xff] }
  0x59   :  { %v105_v57 = vld [vmem:[#allocation7 + $0xb8] sm:$0xff]  ;;  %v104_v2 = vld [vmem:[#allocation7 + $0xb0] sm:$0xff]  ;;  %v1065_v7 = vpack.c.bf16 %v300_v63, %v298_v62  ;;  %v302_v11 = vld [vmem:[#allocation9 + $0x80] sm:$0xff] }
  0x5a   :  { %1058 = vmatpush1.bf16.msra.mxu0 %v1057_v46  ;;  %v1043_v1 = vpack.c.bf16 %v105_v57, %v101_v56  ;;  %v305_v4 = vld [vmem:[#allocation9 + $0x98] sm:$0xff]  ;;  %v1045_v8 = vpack.c.bf16 %v104_v2, %v100_v60  ;;  %v108_v9 = vld [vmem:[#allocation7 + $0xd0] sm:$0xff]  ;;  %v307_v15 = vld [vmem:[#allocation9 + $0xa8] sm:$0xff] }
  0x5b   :  { %1034 = vmatpush1.bf16.msra.mxu1 %v1033_v31  ;;  %1060 = vmatprep.subr.bf16.mxu0 %v1059_v53  ;;  %v109_v5 = vld [vmem:[#allocation7 + $0xd8] sm:$0xff]  ;;  %v1067_v10 = vpack.c.bf16 %v305_v4, %v303_v3  ;;  %v304_v12 = vld [vmem:[#allocation9 + $0x90] sm:$0xff]  ;;  %v306_v20 = vld [vmem:[#allocation9 + $0xa0] sm:$0xff] }
  0x5c   :  { %1036 = vmatprep.subr.bf16.mxu1 %v1035_v36  ;;  %v113_v6 = vld [vmem:[#allocation7 + $0xf8] sm:$0xff]  ;;  %v112_v14 = vld [vmem:[#allocation7 + $0xf0] sm:$0xff]  ;;  %v1069_v17 = vpack.c.bf16 %v304_v12, %v302_v11  ;;  %v311_v22 = vld [vmem:[#allocation9 + $0xc8] sm:$0xff] }
  0x5d   :  { %v1047_v13 = vpack.c.bf16 %v113_v6, %v109_v5  ;;  %v309_v16 = vld [vmem:[#allocation9 + $0xb8] sm:$0xff]  ;;  %v1049_v18 = vpack.c.bf16 %v112_v14, %v108_v9  ;;  %v308_v21 = vld [vmem:[#allocation9 + $0xb0] sm:$0xff]  ;;  %v310_v26 = vld [vmem:[#allocation9 + $0xc0] sm:$0xff] }
  0x5e   :  { %877 = vmatmul.mubr.msk.f32.vlgmr.msra.gmra.mrb[0].mxu1 %vm136_vm0, %v1510_v45  ;;  %1062 = vmatpush1.bf16.msra.mxu0 %v1061_v58  ;;  %v1071_v19 = vpack.c.bf16 %v309_v16, %v307_v15  ;;  %v313_v23 = vld [vmem:[#allocation9 + $0xd8] sm:$0xff]  ;;  %v1073_v24 = vpack.c.bf16 %v308_v21, %v306_v20  ;;  %v312_v27 = vld [vmem:[#allocation9 + $0xd0] sm:$0xff]  ;;  %v315_v28 = vld [vmem:[#allocation9 + $0xe8] sm:$0xff] }
  0x5f   :  { %1038 = vmatpush1.bf16.msra.mxu1 %v1037_v47  ;;  %275 = vmatprep.mubr.f32.mxu1 %v1426_v0  ;;  %v1075_v25 = vpack.c.bf16 %v313_v23, %v311_v22  ;;  %v317_v29 = vld [vmem:[#allocation9 + $0xf8] sm:$0xff]  ;;  %v1077_v30 = vpack.c.bf16 %v312_v27, %v310_v26  ;;  %v314_v32 = vld [vmem:[#allocation9 + $0xe0] sm:$0xff]  ;;  %v316_v33 = vld [vmem:[#allocation9 + $0xf0] sm:$0xff]  ;;  %v116_v23 = vlaneseq }
  0x60   :  { %1040 = vmatprep.subr.bf16.mxu1 %v1039_v51  ;;  %1064 = vmatprep.subr.bf16.mxu0 %v1063_v61  ;;  %v1079_v31 = vpack.c.bf16 %v317_v29, %v315_v28  ;;  %v319_v34 = vld [vmem:[#allocation9 + $0x108] sm:$0xff]  ;;  %v321_v35 = vld [vmem:[#allocation9 + $0x118] sm:$0xff]  ;;  %v1081_v36 = vpack.c.bf16 %v316_v33, %v314_v32  ;;  %v318_v38 = vld [vmem:[#allocation9 + $0x100] sm:$0xff] }
  0x61   :  { %v1083_v37 = vpack.c.bf16 %v321_v35, %v319_v34  ;;  %v320_v39 = vld [vmem:[#allocation9 + $0x110] sm:$0xff]  ;;  %v323_v40 = vld [vmem:[#allocation9 + $0x128] sm:$0xff]  ;;  %v325_v41 = vld [vmem:[#allocation9 + $0x138] sm:$0xff] }
  0x62   :  { %1066 = vmatpush1.bf16.msra.mxu0 %v1065_v7  ;;  %v1085_v42 = vpack.c.bf16 %v320_v39, %v318_v38  ;;  %v1087_v43 = vpack.c.bf16 %v325_v41, %v323_v40  ;;  %v322_v44 = vld [vmem:[#allocation9 + $0x120] sm:$0xff]  ;;  %v327_v46 = vld [vmem:[#allocation9 + $0x148] sm:$0xff]  ;;  %v329_v47 = vld [vmem:[#allocation9 + $0x158] sm:$0xff] }
  0x63   :  { %1042 = vmatpush1.bf16.msra.mxu1 %v1041_v59  ;;  %1068 = vmatprep.subr.bf16.mxu0 %v1067_v10  ;;  %v1091_v49 = vpack.c.bf16 %v329_v47, %v327_v46  ;;  %v326_v50 = vld [vmem:[#allocation9 + $0x140] sm:$0xff]  ;;  %v328_v51 = vld [vmem:[#allocation9 + $0x150] sm:$0xff]  ;;  %v331_v52 = vld [vmem:[#allocation9 + $0x168] sm:$0xff] }
  0x64   :  { %1044 = vmatprep.subr.bf16.mxu1 %v1043_v1  ;;  %v333_v53 = vld [vmem:[#allocation9 + $0x178] sm:$0xff]  ;;  %v1093_v54 = vpack.c.bf16 %v328_v51, %v326_v50  ;;  %v330_v56 = vld [vmem:[#allocation9 + $0x160] sm:$0xff]  ;;  %v332_v57 = vld [vmem:[#allocation9 + $0x170] sm:$0xff] }
  0x65   :  { %v1095_v55 = vpack.c.bf16 %v333_v53, %v331_v52  ;;  %v335_v58 = vld [vmem:[#allocation9 + $0x188] sm:$0xff]  ;;  %v337_v59 = vld [vmem:[#allocation9 + $0x198] sm:$0xff]  ;;  %v1097_v60 = vpack.c.bf16 %v332_v57, %v330_v56  ;;  %v334_v62 = vld [vmem:[#allocation9 + $0x180] sm:$0xff] }
  0x66   :  { %1070 = vmatpush1.bf16.msra.mxu0 %v1069_v17  ;;  %v1099_v61 = vpack.c.bf16 %v337_v59, %v335_v58  ;;  %v336_v63 = vld [vmem:[#allocation9 + $0x190] sm:$0xff]  ;;  %v339_v1 = vld [vmem:[#allocation9 + $0x1a8] sm:$0xff]  ;;  %v341_v2 = vld [vmem:[#allocation9 + $0x1b8] sm:$0xff] }
  0x67   :  { %1046 = vmatpush1.bf16.msra.mxu1 %v1045_v8  ;;  %1072 = vmatprep.subr.bf16.mxu0 %v1071_v19  ;;  %v1101_v3 = vpack.c.bf16 %v336_v63, %v334_v62  ;;  %v1103_v4 = vpack.c.bf16 %v341_v2, %v339_v1  ;;  %v338_v5 = vld [vmem:[#allocation9 + $0x1a0] sm:$0xff]  ;;  %v340_v6 = vld [vmem:[#allocation9 + $0x1b0] sm:$0xff]  ;;  %v343_v7 = vld [vmem:[#allocation9 + $0x1c8] sm:$0xff] }
  0x68   :  { %1048 = vmatprep.subr.bf16.mxu1 %v1047_v13  ;;  %v345_v8 = vld [vmem:[#allocation9 + $0x1d8] sm:$0xff]  ;;  %v1105_v9 = vpack.c.bf16 %v340_v6, %v338_v5  ;;  %v342_v11 = vld [vmem:[#allocation9 + $0x1c0] sm:$0xff]  ;;  %v344_v12 = vld [vmem:[#allocation9 + $0x1d0] sm:$0xff] }
  0x69   :  { %v1107_v10 = vpack.c.bf16 %v345_v8, %v343_v7  ;;  %v1109_v13 = vpack.c.bf16 %v344_v12, %v342_v11  ;;  %v347_v14 = vld [vmem:[#allocation9 + $0x1e8] sm:$0xff]  ;;  %v349_v15 = vld [vmem:[#allocation9 + $0x1f8] sm:$0xff]  ;;  %v346_v17 = vld [vmem:[#allocation9 + $0x1e0] sm:$0xff] }
  0x6a   :  { %1074 = vmatpush1.bf16.msra.mxu0 %v1073_v24  ;;  %v1111_v16 = vpack.c.bf16 %v349_v15, %v347_v14  ;;  %v351_v20 = vld [vmem:[#allocation9 + $0x208] sm:$0xff]  ;;  %v353_v21 = vld [vmem:[#allocation9 + $0x218] sm:$0xff]  ;;  %v1517_v24 = vshrl.u32 %v116_v23, 7  ;;  %v350_v33 = vld [vmem:[#allocation9 + $0x200] sm:$0xff] }
  0x6b   :  { %1050 = vmatpush1.bf16.msra.mxu1 %v1049_v18  ;;  %1076 = vmatprep.subr.bf16.mxu0 %v1075_v25  ;;  %v348_v18 = vld [vmem:[#allocation9 + $0x1f0] sm:$0xff]  ;;  %v1115_v22 = vpack.c.bf16 %v353_v21, %v351_v20  ;;  %v363_v50 = vld [vmem:[#allocation9 + $0x268] sm:$0xff]  ;;  %v365_v51 = vld [vmem:[#allocation9 + $0x278] sm:$0xff] }
  0x6c   :  { %v1113_v19 = vpack.c.bf16 %v348_v18, %v346_v17  ;;  %v118_v25 = vsub.s32 0, %v1517_v24  ;;  %v1520_v26 = vld [vmem:[#allocation10] ss:$8 sm:$0xf]  ;;  %v122_v27 = vsub.s32 1, %v1517_v24  ;;  %v130_v52 = vsub.s32 3, %v1517_v24 }
  0x6d   :  { %v352_v34 = vld [vmem:[#allocation9 + $0x210] sm:$0xff]  ;;  %v367_v57 = vld [vmem:[#allocation9 + $0x288] sm:$0xff]  ;;  %v369_v58 = vld [vmem:[#allocation9 + $0x298] sm:$0xff] }
  0x6e   :  { %878 = vmatmul.mubr.msk.f32.vlgmr.msra.gmra.mrb[2].mxu1 %vm136_vm0, %v1510_v45  ;;  %1078 = vmatpush1.bf16.msra.mxu0 %v1077_v30  ;;  %v324_v45 = vld [vmem:[#allocation9 + $0x130] sm:$0xff]  ;;  %v119_v28 = vrot.slane %v1520_v26, %v118_v25  ;;  %v123_v29 = vrot.slane %v1520_v26, %v122_v27  ;;  %v1117_v39 = vpack.c.bf16 %v352_v34, %v350_v33  ;;  %v366_v63 = vld [vmem:[#allocation9 + $0x280] sm:$0xff]  ;;  %v375_v11 = vld [vmem:[#allocation9 + $0x2c8] sm:$0xff] }
  0x6f   :  { %1080 = vmatprep.subr.bf16.mxu0 %v1079_v31  ;;  %v1089_v48 = vpack.c.bf16 %v324_v45, %v322_v44  ;;  %v359_v44 = vld [vmem:[#allocation9 + $0x248] sm:$0xff]  ;;  %v361_v45 = vld [vmem:[#allocation9 + $0x258] sm:$0xff]  ;;  %v364_v56 = vld [vmem:[#allocation9 + $0x270] sm:$0xff]  ;;  %v131_v59 = vrot.slane %v1520_v26, %v130_v52  ;;  %v1131_v62 = vpack.c.bf16 %v369_v58, %v367_v57 }
  0x70   :  { %v1123_v47 = vpack.c.bf16 %v361_v45, %v359_v44  ;;  %v368_v1 = vld [vmem:[#allocation9 + $0x290] sm:$0xff]  ;;  %v377_v12 = vld [vmem:[#allocation9 + $0x2d8] sm:$0xff]  ;;  %v374_v15 = vld [vmem:[#allocation9 + $0x2c0] sm:$0xff] }
  0x71   :  { %v1133_v6 = vpack.c.bf16 %v368_v1, %v366_v63  ;;  %v1139_v14 = vpack.c.bf16 %v377_v12, %v375_v11  ;;  %v379_v17 = vld [vmem:[#allocation9 + $0x2e8] sm:$0xff]  ;;  %v381_v18 = vld [vmem:[#allocation9 + $0x2f8] sm:$0xff]  ;;  %v378_v21 = vld [vmem:[#allocation9 + $0x2e0] sm:$0xff] }
  0x72   :  { %1082 = vmatpush1.bf16.msra.mxu0 %v1081_v36  ;;  %v355_v36 = vld [vmem:[#allocation9 + $0x228] sm:$0xff]  ;;  %v1143_v20 = vpack.c.bf16 %v381_v18, %v379_v17  ;;  %v389_v34 = vld [vmem:[#allocation9 + $0x338] sm:$0xff]  ;;  %v392_v44 = vld [vmem:[#allocation9 + $0x350] sm:$0xff] }
  0x73   :  { %1084 = vmatprep.subr.bf16.mxu0 %v1083_v37  ;;  %v357_v37 = vld [vmem:[#allocation9 + $0x238] sm:$0xff]  ;;  %v383_v23 = vld [vmem:[#allocation9 + $0x308] sm:$0xff]  ;;  %v404_v63 = vld [vmem:[#allocation9 + $0x3b0] sm:$0xff] }
  0x74   :  { %v1119_v41 = vpack.c.bf16 %v357_v37, %v355_v36  ;;  %v387_v33 = vld [vmem:[#allocation9 + $0x328] sm:$0xff]  ;;  %v386_v37 = vld [vmem:[#allocation9 + $0x320] sm:$0xff]  ;;  %v401_v52 = vld [vmem:[#allocation9 + $0x398] sm:$0xff] }
  0x75   :  { %v1151_v36 = vpack.c.bf16 %v389_v34, %v387_v33  ;;  %v395_v45 = vld [vmem:[#allocation9 + $0x368] sm:$0xff]  ;;  %v405_v58 = vld [vmem:[#allocation9 + $0x3b8] sm:$0xff] }
  0x76   :  { %1086 = vmatpush1.bf16.msra.mxu0 %v1085_v42  ;;  %v354_v42 = vld [vmem:[#allocation9 + $0x220] sm:$0xff]  ;;  %v403_v57 = vld [vmem:[#allocation9 + $0x3a8] sm:$0xff] }
  0x77   :  { %1088 = vmatprep.subr.bf16.mxu0 %v1087_v43  ;;  %v356_v43 = vld [vmem:[#allocation9 + $0x230] sm:$0xff]  ;;  %v407_v1 = vld [vmem:[#allocation9 + $0x3c8] sm:$0xff] }
  0x78   :  { %v1121_v46 = vpack.c.bf16 %v356_v43, %v354_v42  ;;  %v390_v43 = vld [vmem:[#allocation9 + $0x340] sm:$0xff] }
  0x7a   :  { %1090 = vmatpush1.bf16.msra.mxu0 %v1089_v48  ;;  %v358_v48 = vld [vmem:[#allocation9 + $0x240] sm:$0xff] }
  0x7b   :  { %1092 = vmatprep.subr.bf16.mxu0 %v1091_v49  ;;  %v360_v49 = vld [vmem:[#allocation9 + $0x250] sm:$0xff] }
  0x7c   :  { %v1125_v53 = vpack.c.bf16 %v360_v49, %v358_v48  ;;  %v394_v49 = vld [vmem:[#allocation9 + $0x360] sm:$0xff] }
  0x7e   :  { %1094 = vmatpush1.bf16.msra.mxu0 %v1093_v54  ;;  %v1127_v54 = vpack.c.bf16 %v365_v51, %v363_v50  ;;  %v396_v50 = vld [vmem:[#allocation9 + $0x370] sm:$0xff]  ;;  %v399_v51 = vld [vmem:[#allocation9 + $0x388] sm:$0xff] }
  0x7f   :  { %1096 = vmatprep.subr.bf16.mxu0 %v1095_v55  ;;  %v362_v55 = vld [vmem:[#allocation9 + $0x260] sm:$0xff] }
  0x82   :  { %1098 = vmatpush1.bf16.msra.mxu0 %v1097_v60  ;;  %v1129_v60 = vpack.c.bf16 %v364_v56, %v362_v55  ;;  %v398_v55 = vld [vmem:[#allocation9 + $0x380] sm:$0xff]  ;;  %v400_v56 = vld [vmem:[#allocation9 + $0x390] sm:$0xff] }
  0x83   :  { %1100 = vmatprep.subr.bf16.mxu0 %v1099_v61 }
  0x86   :  { %1102 = vmatpush1.bf16.msra.mxu0 %v1101_v3  ;;  %v371_v3 = vld [vmem:[#allocation9 + $0x2a8] sm:$0xff] }
  0x87   :  { %1104 = vmatprep.subr.bf16.mxu0 %v1103_v4  ;;  %v373_v4 = vld [vmem:[#allocation9 + $0x2b8] sm:$0xff] }
  0x88   :  { %v1135_v8 = vpack.c.bf16 %v373_v4, %v371_v3  ;;  %v126_v4 = vsub.s32 2, %v1517_v24 }
  0x8a   :  { %1106 = vmatpush1.bf16.msra.mxu0 %v1105_v9  ;;  %v370_v9 = vld [vmem:[#allocation9 + $0x2a0] sm:$0xff]  ;;  %v127_v11 = vrot.slane %v1520_v26, %v126_v4 }
  0x8b   :  { %1108 = vmatprep.subr.bf16.mxu0 %v1107_v10  ;;  %v372_v10 = vld [vmem:[#allocation9 + $0x2b0] sm:$0xff] }
  0x8e   :  { %1110 = vmatpush1.bf16.msra.mxu0 %v1109_v13  ;;  %v1137_v13 = vpack.c.bf16 %v372_v10, %v370_v9  ;;  %v413_v9 = vld [vmem:[#allocation9 + $0x3f8] sm:$0xff] }
  0x8f   :  { %1112 = vmatprep.subr.bf16.mxu0 %v1111_v16  ;;  %v376_v16 = vld [vmem:[#allocation9 + $0x2d0] sm:$0xff] }
  0x92   :  { %1114 = vmatpush1.bf16.msra.mxu0 %v1113_v19  ;;  %v1141_v19 = vpack.c.bf16 %v376_v16, %v374_v15 }
  0x93   :  { %1116 = vmatprep.subr.bf16.mxu0 %v1115_v22  ;;  %v380_v22 = vld [vmem:[#allocation9 + $0x2f0] sm:$0xff] }
 0x131   :  { %v206_v30 = vpop.f32.mrb[0].mxu1 }
 0x132   :  { %v207_v31 = vadd.f32 %v206_v30, %v119_v28  ;;  %v208_v32 = vpop.f32.mrb[1].mxu1  ;;  %v385_v28 = vld [vmem:[#allocation9 + $0x318] sm:$0xff] }
 0x133   :  { %v209_v35 = vadd.f32 %v208_v32, %v123_v29  ;;  %v1145_v29 = vpack.c.bf16 %v380_v22, %v378_v21  ;;  %v1147_v30 = vpack.c.bf16 %v385_v28, %v383_v23  ;;  %v384_v32 = vld [vmem:[#allocation9 + $0x310] sm:$0xff] }
 0x134   :  { %v282_v40 = vmax.f32 %v207_v31, 0.0  ;;  %v382_v31 = vld [vmem:[#allocation9 + $0x300] sm:$0xff] }
 0x135   :  { %v283_v38 = vmax.f32 %v209_v35, 0.0  ;;  %v1149_v35 = vpack.c.bf16 %v384_v32, %v382_v31 }
 0x137   :  { %491 = vmatprep.mubr.f32.mxu0 %v283_v38  ;;  %v388_v38 = vld [vmem:[#allocation9 + $0x330] sm:$0xff] }
 0x138   :  { %492 = vmatmul.mubr.f32.vlgmr.msra.gmra.mrb[0].mxu0 %v282_v40  ;;  %v393_v40 = vld [vmem:[#allocation9 + $0x358] sm:$0xff] }
 0x139   :  { %1118 = vmatpush1.bf16.msra.mxu0 %v1117_v39  ;;  %v391_v39 = vld [vmem:[#allocation9 + $0x348] sm:$0xff] }
 0x13a   :  { %1120 = vmatprep.subr.bf16.mxu0 %v1119_v41  ;;  %v1153_v41 = vpack.c.bf16 %v388_v38, %v386_v37  ;;  %v1155_v42 = vpack.c.bf16 %v393_v40, %v391_v39 }
 0x13d   :  { %1122 = vmatpush1.bf16.msra.mxu0 %v1121_v46  ;;  %v397_v46 = vld [vmem:[#allocation9 + $0x378] sm:$0xff] }
 0x13e   :  { %1124 = vmatprep.subr.bf16.mxu0 %v1123_v47  ;;  %v1157_v47 = vpack.c.bf16 %v392_v44, %v390_v43  ;;  %v1159_v48 = vpack.c.bf16 %v397_v46, %v395_v45 }
 0x141   :  { %1126 = vmatpush1.bf16.msra.mxu0 %v1125_v53  ;;  %v1531_v61 = vpop.f32.mrb[2].mxu1  ;;  %v1161_v53 = vpack.c.bf16 %v396_v50, %v394_v49 }
 0x142   :  { %1128 = vmatprep.subr.bf16.mxu0 %v1127_v54  ;;  %v279_v2 = vpop.f32.mrb[3].mxu1  ;;  %v1163_v54 = vpack.c.bf16 %v401_v52, %v399_v51  ;;  %v278_v16 = vadd.f32 %v1531_v61, %v127_v11 }
 0x143   :  { %v280_v5 = vadd.f32 %v279_v2, %v131_v59  ;;  %v1165_v59 = vpack.c.bf16 %v400_v56, %v398_v55  ;;  %v409_v2 = vld [vmem:[#allocation9 + $0x3d8] sm:$0xff] }
 0x144   :  { %v284_v17 = vmax.f32 %v278_v16, 0.0 }
 0x145   :  { %1130 = vmatpush1.bf16.msra.mxu0 %v1129_v60  ;;  %v285_v7 = vmax.f32 %v280_v5, 0.0  ;;  %v1167_v60 = vpack.c.bf16 %v405_v58, %v403_v57  ;;  %v1171_v5 = vpack.c.bf16 %v409_v2, %v407_v1 }
 0x146   :  { %1132 = vmatprep.subr.bf16.mxu0 %v1131_v62  ;;  %v402_v62 = vld [vmem:[#allocation9 + $0x3a0] sm:$0xff] }
 0x147   :  { %562 = vmatprep.mubr.f32.mxu0 %v285_v7  ;;  %v1169_v3 = vpack.c.bf16 %v404_v63, %v402_v62  ;;  %v408_v7 = vld [vmem:[#allocation9 + $0x3d0] sm:$0xff] }
 0x149   :  { %1134 = vmatpush1.bf16.msra.mxu0 %v1133_v6  ;;  %v406_v6 = vld [vmem:[#allocation9 + $0x3c0] sm:$0xff] }
 0x14a   :  { %1136 = vmatprep.subr.bf16.mxu0 %v1135_v8  ;;  %v411_v8 = vld [vmem:[#allocation9 + $0x3e8] sm:$0xff]  ;;  %v1173_v10 = vpack.c.bf16 %v408_v7, %v406_v6 }
 0x14b   :  { %v1175_v12 = vpack.c.bf16 %v413_v9, %v411_v8 }
 0x14d   :  { %1138 = vmatpush1.bf16.msra.mxu0 %v1137_v13  ;;  %v410_v13 = vld [vmem:[#allocation9 + $0x3e0] sm:$0xff] }
 0x14e   :  { %1140 = vmatprep.subr.bf16.mxu0 %v1139_v14  ;;  %v412_v14 = vld [vmem:[#allocation9 + $0x3f0] sm:$0xff] }
 0x14f   :  { %v1177_v15 = vpack.c.bf16 %v412_v14, %v410_v13 }
 0x151   :  { %1142 = vmatpush1.bf16.msra.mxu0 %v1141_v19 }
 0x152   :  { %1144 = vmatprep.subr.bf16.mxu0 %v1143_v20 }
 0x155   :  { %1146 = vmatpush1.bf16.msra.mxu0 %v1145_v29 }
 0x156   :  { %1148 = vmatprep.subr.bf16.mxu0 %v1147_v30 }
 0x159   :  { %1150 = vmatpush1.bf16.msra.mxu0 %v1149_v35 }
 0x15a   :  { %1152 = vmatprep.subr.bf16.mxu0 %v1151_v36 }
 0x15d   :  { %1154 = vmatpush1.bf16.msra.mxu0 %v1153_v41 }
 0x15e   :  { %1156 = vmatprep.subr.bf16.mxu0 %v1155_v42 }
 0x161   :  { %1158 = vmatpush1.bf16.msra.mxu0 %v1157_v47 }
 0x162   :  { %1160 = vmatprep.subr.bf16.mxu0 %v1159_v48 }
 0x165   :  { %1162 = vmatpush1.bf16.msra.mxu0 %v1161_v53 }
 0x166   :  { %1164 = vmatprep.subr.bf16.mxu0 %v1163_v54 }
 0x169   :  { %1166 = vmatpush1.bf16.msra.mxu0 %v1165_v59 }
 0x16a   :  { %1168 = vmatprep.subr.bf16.mxu0 %v1167_v60 }
 0x16d   :  { %1170 = vmatpush1.bf16.msra.mxu0 %v1169_v3 }
 0x16e   :  { %1172 = vmatprep.subr.bf16.mxu0 %v1171_v5 }
 0x171   :  { %1174 = vmatpush1.bf16.msra.mxu0 %v1173_v10 }
 0x172   :  { %1176 = vmatprep.subr.bf16.mxu0 %v1175_v12 }
 0x175   :  { %1178 = vmatpush1.bf16.msra.mxu0 %v1177_v15 }
 0x178   :  { %563 = vmatmul.mubr.f32.vlgmr.msra.gmra.mrb[0].mxu0 %v284_v17 }
 0x179   :  { %1373 = shalt.err (!%p1370_p6)  }
 0x17a   :  { %s1374_s24 = scalar_lea.vmem %s78_s17, 8192  ;;  %p1379_p8 = scmp.lt.s32.totalorder %s78_s17, %s78_s17 }
 0x17b   :  { %p1375_p7 = scmp.ne.s32.totalorder %s78_s17, %s1374_s24  ;;  %p1380_p9 = scmp.lt.s32.totalorder %s1374_s24, %s1374_s24 }
 0x17d   :  { %p1381_p10 = por %p1380_p9, %p1379_p8 }
 0x17f   :  { %p1382_p11 = pnand %p1381_p10, %p1375_p7 }
 0x181   :  { %1385 = shalt.err (!%p1382_p11)  }
 0x182   :  { %80 = dma.hbm_to_vmem [thread:$0]  %s1592_s3, 8192, %s78_s17, [#allocation3]  ;;  %v415_v26 = vld [vmem:[#allocation10 + $0x1] ss:$8 sm:$0x3] }
 0x183   :  { %v420_v61 = vrot.slane %v415_v26, %v118_v25  ;;  %v424_v18 = vrot.slane %v415_v26, %v122_v27 }
 0x24b   :  { %v564_v19 = vpop.f32.mrb[0].mxu0 }
 0x24c   :  { %v1552_v20 = vadd.f32 %v564_v19, %v420_v61  ;;  %v566_v21 = vpop.f32.mrb[1].mxu0 }
 0x24d   :  { %v1260_v22 = vadd.f32 %v566_v21, %v424_v18 }
 0x24e   :  { %v569_v23 = vmax.f32 %v1552_v20, 0.0 }
 0x24f   :  { %v570_v28 = vmax.f32 %v1260_v22, 0.0 }
 0x250   :  { %1414 = dma.done.wait [#allocation3], 8192 }
 0x251   :  { %1415 = vsyncadd [#allocation3], 4294959104  ;;  %703 = vmatprep.mubr.f32.mxu1 %v570_v28  ;;  %v590_v29 = vld [vmem:[#allocation2 + $0x80] sm:$0xff]  ;;  %v591_v30 = vld [vmem:[#allocation2 + $0x88] sm:$0xff]  ;;  %v1428_v15 = vmov 0.0|0.0   ;;  %vm1429_vm1 = vmmov 0  }
 0x252   :  { %v574_v31 = vld [vmem:[#allocation2] sm:$0xff]  ;;  %v1179_v32 = vpack.c.bf16 %v591_v30, %v590_v29  ;;  %v575_v33 = vld [vmem:[#allocation2 + $0x8] sm:$0xff]  ;;  %v592_v25 = vld [vmem:[#allocation2 + $0x90] sm:$0xff]  ;;  %s1430_s3 = smov [#allocation12]  }
 0x253   :  { %v593_v34 = vld [vmem:[#allocation2 + $0x98] sm:$0xff]  ;;  %v1181_v24 = vpack.c.bf16 %v575_v33, %v574_v31  ;;  %v576_v35 = vld [vmem:[#allocation2 + $0x10] sm:$0xff]  ;;  %v594_v37 = vld [vmem:[#allocation2 + $0xa0] sm:$0xff]  ;;  %s860_s27 = sshll.u32 %s1430_s3, 4  ;;  %s861_s27 = int_to_ptr.vmem [resolvable:$true] %s860_s27 }
 0x254   :  { %v1183_v27 = vpack.c.bf16 %v593_v34, %v592_v25  ;;  %v577_v36 = vld [vmem:[#allocation2 + $0x18] sm:$0xff]  ;;  %1180 = vmatprep.subr.bf16.mxu1 %v1179_v32  ;;  %v595_v38 = vld [vmem:[#allocation2 + $0xa8] sm:$0xff]  ;;  %v578_v41 = vld [vmem:[#allocation2 + $0x20] sm:$0xff]  ;;  %s1386_s0 = scalar_lea.vmem %s861_s27, 128  ;;  %p1391_p13 = scmp.lt.s32.totalorder %s861_s27, %s861_s27 }
 0x255   :  { %1182 = vmatpush3.bf16.msra.mxu1 %v1181_v24  ;;  %v1185_v39 = vpack.c.bf16 %v577_v36, %v576_v35  ;;  %v1187_v40 = vpack.c.bf16 %v595_v38, %v594_v37  ;;  %v579_v42 = vld [vmem:[#allocation2 + $0x28] sm:$0xff]  ;;  %v596_v43 = vld [vmem:[#allocation2 + $0xb0] sm:$0xff]  ;;  %v597_v44 = vld [vmem:[#allocation2 + $0xb8] sm:$0xff]  ;;  %p1387_p12 = scmp.ne.s32.totalorder %s861_s27, %s1386_s0  ;;  %p1392_p0 = scmp.lt.s32.totalorder %s1386_s0, %s1386_s0 }
 0x256   :  { %1184 = vmatprep.subr.bf16.mxu1 %v1183_v27  ;;  %v1189_v45 = vpack.c.bf16 %v579_v42, %v578_v41  ;;  %v1191_v46 = vpack.c.bf16 %v597_v44, %v596_v43  ;;  %v580_v47 = vld [vmem:[#allocation2 + $0x30] sm:$0xff]  ;;  %v581_v48 = vld [vmem:[#allocation2 + $0x38] sm:$0xff]  ;;  %v598_v49 = vld [vmem:[#allocation2 + $0xc0] sm:$0xff] }
 0x257   :  { %v599_v50 = vld [vmem:[#allocation2 + $0xc8] sm:$0xff]  ;;  %v1193_v51 = vpack.c.bf16 %v581_v48, %v580_v47  ;;  %v582_v53 = vld [vmem:[#allocation2 + $0x40] sm:$0xff]  ;;  %v600_v55 = vld [vmem:[#allocation2 + $0xd0] sm:$0xff]  ;;  %p1393_p1 = por %p1392_p0, %p1391_p13 }
 0x258   :  { %v1195_v52 = vpack.c.bf16 %v599_v50, %v598_v49  ;;  %v583_v54 = vld [vmem:[#allocation2 + $0x48] sm:$0xff]  ;;  %v601_v56 = vld [vmem:[#allocation2 + $0xd8] sm:$0xff]  ;;  %v584_v59 = vld [vmem:[#allocation2 + $0x50] sm:$0xff] }
 0x259   :  { %1186 = vmatpush3.bf16.msra.mxu1 %v1185_v39  ;;  %v1197_v57 = vpack.c.bf16 %v583_v54, %v582_v53  ;;  %v1199_v58 = vpack.c.bf16 %v601_v56, %v600_v55  ;;  %v585_v60 = vld [vmem:[#allocation2 + $0x58] sm:$0xff]  ;;  %v602_v62 = vld [vmem:[#allocation2 + $0xe0] sm:$0xff]  ;;  %v603_v63 = vld [vmem:[#allocation2 + $0xe8] sm:$0xff]  ;;  %p1394_p2 = pnand %p1393_p1, %p1387_p12 }
 0x25a   :  { %1188 = vmatprep.subr.bf16.mxu1 %v1187_v40  ;;  %v1201_v1 = vpack.c.bf16 %v585_v60, %v584_v59  ;;  %v1203_v2 = vpack.c.bf16 %v603_v63, %v602_v62  ;;  %v586_v3 = vld [vmem:[#allocation2 + $0x60] sm:$0xff]  ;;  %v587_v4 = vld [vmem:[#allocation2 + $0x68] sm:$0xff]  ;;  %v604_v5 = vld [vmem:[#allocation2 + $0xf0] sm:$0xff] }
 0x25b   :  { %v605_v6 = vld [vmem:[#allocation2 + $0xf8] sm:$0xff]  ;;  %v1205_v7 = vpack.c.bf16 %v587_v4, %v586_v3  ;;  %v588_v9 = vld [vmem:[#allocation2 + $0x70] sm:$0xff]  ;;  %v606_v12 = vld [vmem:[#allocation2 + $0x100] sm:$0xff] }
 0x25c   :  { %v1207_v8 = vpack.c.bf16 %v605_v6, %v604_v5  ;;  %v589_v10 = vld [vmem:[#allocation2 + $0x78] sm:$0xff]  ;;  %v607_v13 = vld [vmem:[#allocation2 + $0x108] sm:$0xff]  ;;  %v608_v16 = vld [vmem:[#allocation2 + $0x110] sm:$0xff] }
 0x25d   :  { %1190 = vmatpush3.bf16.msra.mxu1 %v1189_v45  ;;  %v1209_v11 = vpack.c.bf16 %v589_v10, %v588_v9  ;;  %v1212_v14 = vpack.c.bf16 %v607_v13, %v606_v12  ;;  %v609_v17 = vld [vmem:[#allocation2 + $0x118] sm:$0xff]  ;;  %v610_v61 = vld [vmem:[#allocation2 + $0x120] sm:$0xff]  ;;  %v611_v18 = vld [vmem:[#allocation2 + $0x128] sm:$0xff] }
 0x25e   :  { %1192 = vmatprep.subr.bf16.mxu1 %v1191_v46  ;;  %v1215_v26 = vpack.c.bf16 %v609_v17, %v608_v16  ;;  %v1218_v19 = vpack.c.bf16 %v611_v18, %v610_v61  ;;  %v612_v21 = vld [vmem:[#allocation2 + $0x130] sm:$0xff]  ;;  %v613_v22 = vld [vmem:[#allocation2 + $0x138] sm:$0xff]  ;;  %v614_v29 = vld [vmem:[#allocation2 + $0x140] sm:$0xff] }
 0x25f   :  { %v1221_v28 = vpack.c.bf16 %v613_v22, %v612_v21  ;;  %v615_v30 = vld [vmem:[#allocation2 + $0x148] sm:$0xff]  ;;  %v617_v31 = vld [vmem:[#allocation2 + $0x158] sm:$0xff]  ;;  %v618_v33 = vld [vmem:[#allocation2 + $0x160] sm:$0xff] }
 0x260   :  { %v1224_v20 = vpack.c.bf16 %v615_v30, %v614_v29  ;;  %v619_v25 = vld [vmem:[#allocation2 + $0x168] sm:$0xff]  ;;  %v620_v24 = vld [vmem:[#allocation2 + $0x170] sm:$0xff]  ;;  %v621_v27 = vld [vmem:[#allocation2 + $0x178] sm:$0xff] }
 0x261   :  { %1194 = vmatpush3.bf16.msra.mxu1 %v1193_v51  ;;  %v1230_v34 = vpack.c.bf16 %v619_v25, %v618_v33  ;;  %v1233_v35 = vpack.c.bf16 %v621_v27, %v620_v24  ;;  %v638_v37 = vld [vmem:[#allocation10 + $0x2] ss:$0 sm:$0xff]  ;;  %v622_v40 = vld [vmem:[#allocation2 + $0x180] sm:$0xff]  ;;  %v624_v45 = vld [vmem:[#allocation2 + $0x190] sm:$0xff] }
 0x262   :  { %1196 = vmatprep.subr.bf16.mxu1 %v1195_v52  ;;  %v623_v41 = vld [vmem:[#allocation2 + $0x188] sm:$0xff]  ;;  %v625_v46 = vld [vmem:[#allocation2 + $0x198] sm:$0xff]  ;;  %v626_v48 = vld [vmem:[#allocation2 + $0x1a0] sm:$0xff] }
 0x263   :  { %v1236_v43 = vpack.c.bf16 %v623_v41, %v622_v40  ;;  %v1239_v47 = vpack.c.bf16 %v625_v46, %v624_v45  ;;  %v627_v49 = vld [vmem:[#allocation2 + $0x1a8] sm:$0xff]  ;;  %v628_v51 = vld [vmem:[#allocation2 + $0x1b0] sm:$0xff]  ;;  %v629_v52 = vld [vmem:[#allocation2 + $0x1b8] sm:$0xff] }
 0x264   :  { %v1242_v50 = vpack.c.bf16 %v627_v49, %v626_v48  ;;  %v1245_v53 = vpack.c.bf16 %v629_v52, %v628_v51  ;;  %v630_v54 = vld [vmem:[#allocation2 + $0x1c0] sm:$0xff]  ;;  %v631_v55 = vld [vmem:[#allocation2 + $0x1c8] sm:$0xff]  ;;  %v636_v63 = vld [vmem:[#allocation2 + $0x1f0] sm:$0xff] }
 0x265   :  { %1198 = vmatpush3.bf16.msra.mxu1 %v1197_v57  ;;  %v1248_v56 = vpack.c.bf16 %v631_v55, %v630_v54  ;;  %v633_v57 = vld [vmem:[#allocation2 + $0x1d8] sm:$0xff]  ;;  %v634_v59 = vld [vmem:[#allocation2 + $0x1e0] sm:$0xff]  ;;  %v635_v60 = vld [vmem:[#allocation2 + $0x1e8] sm:$0xff] }
 0x266   :  { %1200 = vmatprep.subr.bf16.mxu1 %v1199_v58  ;;  %v1254_v62 = vpack.c.bf16 %v635_v60, %v634_v59  ;;  %v710_v3 = vld [vmem:[#allocation10 + $0x3] ss:$0 sm:$0xff] }
 0x269   :  { %1202 = vmatpush3.bf16.msra.mxu1 %v1201_v1  ;;  %v637_v1 = vld [vmem:[#allocation2 + $0x1f8] sm:$0xff] }
 0x26a   :  { %1204 = vmatprep.subr.bf16.mxu1 %v1203_v2  ;;  %v1257_v2 = vpack.c.bf16 %v637_v1, %v636_v63 }
 0x26d   :  { %1206 = vmatpush3.bf16.msra.mxu1 %v1205_v7 }
 0x26e   :  { %1208 = vmatprep.subr.bf16.mxu1 %v1207_v8  ;;  %v782_v8 = vld [vmem:[#allocation10 + $0x4] ss:$0 sm:$0xff] }
 0x271   :  { %1210 = vmatpush3.bf16.msra.mxu1 %v1209_v11 }
 0x272   :  { %1211 = vmatprep.subr.bf16.mxu1 %v1428_v15 }
 0x274   :  { %704 = vmatmul.mubr.f32.vlgmr.msra.gmra.mrb[4].mxu1 %v569_v23  ;;  %v616_v23 = vld [vmem:[#allocation2 + $0x150] sm:$0xff] }
 0x275   :  { %1213 = vmatpush3.bf16.msra.mxu1 %v1212_v14  ;;  %v1227_v32 = vpack.c.bf16 %v617_v31, %v616_v23  ;;  %981 = vmatprep.mubr.msk.f32.mxu1 %vm1429_vm1, %v1426_v0 }
 0x276   :  { %1214 = vmatprep.subr.bf16.mxu1 %v1428_v15 }
 0x279   :  { %1216 = vmatpush3.bf16.msra.mxu1 %v1215_v26 }
 0x27a   :  { %1217 = vmatprep.subr.bf16.mxu1 %v1428_v15 }
 0x27d   :  { %1219 = vmatpush3.bf16.msra.mxu1 %v1218_v19 }
 0x27e   :  { %1220 = vmatprep.subr.bf16.mxu1 %v1428_v15 }
 0x281   :  { %1222 = vmatpush3.bf16.msra.mxu1 %v1221_v28 }
 0x282   :  { %1223 = vmatprep.subr.bf16.mxu1 %v1428_v15 }
 0x285   :  { %1225 = vmatpush3.bf16.msra.mxu1 %v1224_v20 }
 0x286   :  { %1226 = vmatprep.subr.bf16.mxu1 %v1428_v15 }
 0x289   :  { %1228 = vmatpush3.bf16.msra.mxu1 %v1227_v32 }
 0x28a   :  { %1229 = vmatprep.subr.bf16.mxu1 %v1428_v15 }
 0x28d   :  { %1231 = vmatpush3.bf16.msra.mxu1 %v1230_v34 }
 0x28e   :  { %1232 = vmatprep.subr.bf16.mxu1 %v1428_v15 }
 0x291   :  { %1234 = vmatpush3.bf16.msra.mxu1 %v1233_v35 }
 0x292   :  { %1235 = vmatprep.subr.bf16.mxu1 %v1428_v15 }
 0x347   :  { %v912_v36 = vpop.f32.mrb[4].mxu1 }
 0x348   :  { %v913_v38 = vpop.f32.mrb[5].mxu1 }
 0x349   :  { %v914_v39 = vadd.f32 %v913_v38, %v912_v36 }
 0x34b   :  { %v706_v42 = vadd.f32 %v914_v39, %v638_v37 }
 0x34d   :  { %v709_v44 = vmax.f32 %v706_v42, 0.0 }
 0x34f   :  { %982 = vmatmul.mubr.f32.vlgmr.msra.gmra.mrb[6].mxu1 %v709_v44 }
 0x350   :  { %1237 = vmatpush3.bf16.msra.mxu1 %v1236_v43  ;;  %1016 = vmatprep.mubr.msk.f32.mxu1 %vm1429_vm1, %v1426_v0  ;;  %v632_v0 = vld [vmem:[#allocation2 + $0x1d0] sm:$0xff] }
 0x351   :  { %1238 = vmatprep.subr.bf16.mxu1 %v1428_v15  ;;  %v1251_v58 = vpack.c.bf16 %v633_v57, %v632_v0 }
 0x354   :  { %1240 = vmatpush3.bf16.msra.mxu1 %v1239_v47 }
 0x355   :  { %1241 = vmatprep.subr.bf16.mxu1 %v1428_v15 }
 0x358   :  { %1243 = vmatpush3.bf16.msra.mxu1 %v1242_v50 }
 0x359   :  { %1244 = vmatprep.subr.bf16.mxu1 %v1428_v15 }
 0x35c   :  { %1246 = vmatpush3.bf16.msra.mxu1 %v1245_v53 }
 0x35d   :  { %1247 = vmatprep.subr.bf16.mxu1 %v1428_v15 }
 0x360   :  { %1249 = vmatpush3.bf16.msra.mxu1 %v1248_v56 }
 0x361   :  { %1250 = vmatprep.subr.bf16.mxu1 %v1428_v15 }
 0x364   :  { %1252 = vmatpush3.bf16.msra.mxu1 %v1251_v58 }
 0x365   :  { %1253 = vmatprep.subr.bf16.mxu1 %v1428_v15 }
 0x368   :  { %1255 = vmatpush3.bf16.msra.mxu1 %v1254_v62 }
 0x369   :  { %1256 = vmatprep.subr.bf16.mxu1 %v1428_v15 }
 0x36c   :  { %1258 = vmatpush3.bf16.msra.mxu1 %v1257_v2 }
 0x422   :  { %v777_v4 = vpop.f32.mrb[6].mxu1 }
 0x423   :  { %v778_v5 = vadd.f32 %v777_v4, %v710_v3  ;;  %v983_v6 = vpop.f32.mrb[7].mxu1 }
 0x425   :  { %v781_v7 = vmax.f32 %v778_v5, 0.0 }
 0x427   :  { %1017 = vmatmul.mubr.f32.vlgmr.msra.gmra.mrb[8].mxu1 %v781_v7 }
 0x4fa   :  { %v849_v9 = vpop.f32.mrb[8].mxu1 }
 0x4fb   :  { %v850_v10 = vadd.f32 %v849_v9, %v782_v8  ;;  %v1018_v11 = vpop.f32.mrb[9].mxu1 }
 0x4fd   :  { %853 = vst [vmem:[#allocation12] sm:$0xff] %v850_v10 }
 0x4fe   :  { %1397 = shalt.err (!%p1394_p2)
}
 0x4ff   :  { %s1398_s30 = scalar_lea.hbm %s1594_s5, 128 }
 0x500   :  { %p1399_p3 = scmp.ne.s32.totalorder %s1594_s5, %s1398_s30  ;;  %p1402_p4 = scmp.lt.u32.totalorder %s1398_s30, %s1594_s5 }
 0x502   :  { %p1404_p5 = pnand %p1402_p4, %p1399_p3 }
 0x504   :  { %1407 = shalt.err (!%p1404_p5)
}
 0x505   :  { %863 = dma.vmem_to_hbm [thread:$0]  %s861_s27, 128, %s1594_s5, [#allocation6]  }
 0x506   :  { %1416 = dma.done.wait [#allocation6], 128  }
 0x507   :  { %1417 = vsyncadd [#allocation6], 4294967168 }
 0x508   :  { %867 = vsyncpa [#allocation5], 1 }
 0x509   :  { %868 = vsyncpa [#allocation8], 1 }
 0x50a   :  { %869 = vsyncpa [#allocation11], 1 }
 0x50b   :  { %870 = vsyncpa [#allocation6], 1 }
 0x50c   :  { %871 = vsyncmov [#allocation3] }
 0x50f   :  { %s872_s13 = vpop.sfrf %871 }
 0x510   :  { %p879_p6 = scmp.ne.s32.totalorder %s872_s13, 0 }
 0x512   :  { %876 = shalt.err (%p879_p6)  }

</bundles_post_ra>
